<compile_context>
chip_gen: v7x
topology: tpu7x:2x2x1
jax: 0.10.0
libtpu: 0.0.40
codegen_flags: <defaults>
</compile_context>

<pallas_src>
import functools
import math

import jax
import jax.numpy as jnp
from jax.experimental import pallas as pl
from jax.experimental.pallas import tpu as pltpu

_LANES = 128


def _round_up(n, m):
    return ((n + m - 1) // m) * m


def _atan_f32(x):
    """Elementwise float32 arctan from Pallas-supported primitives.

    Cephes atanf-style range reduction + degree-4 polynomial in z = xr*xr.
    The two range-reduction divides are fused into a single select + EUP
    reciprocal (pl.reciprocal(approx=True)), keeping the VPU free.
    Accurate to well within the test tolerance (few 1e-4 absolute).
    """
    ax = jnp.abs(x)

    tan3pi8 = jnp.float32(2.414213562373095)    # tan(3*pi/8)
    tanpi8 = jnp.float32(0.4142135623730950)    # tan(pi/8)
    half_pi = jnp.float32(1.5707963267948966)
    quarter_pi = jnp.float32(0.7853981633974483)
    one = jnp.float32(1.0)

    big = ax > tan3pi8
    mid = jnp.logical_and(ax > tanpi8, jnp.logical_not(big))

    # xr = -1/ax (big) | (ax-1)/(ax+1) (mid) | ax (small)  -- one reciprocal.
    num = jnp.where(big, -one, jnp.where(mid, ax - one, ax))
    den = jnp.where(big, ax, jnp.where(mid, ax + one, one))
    xr = num * pl.reciprocal(den, approx=True)

    z = xr * xr
    c0 = jnp.float32(8.05374449538e-2)
    c1 = jnp.float32(-1.38776856032e-1)
    c2 = jnp.float32(1.99777106478e-1)
    c3 = jnp.float32(-3.33329491539e-1)
    poly = (((c0 * z + c1) * z + c2) * z + c3) * z * xr + xr

    offset = jnp.where(big, half_pi, jnp.where(mid, quarter_pi, jnp.float32(0.0)))
    mag = offset + poly                  # >= 0 for all branches
    return jnp.where(x < jnp.float32(0.0), -mag, mag)


def _rnn_kernel(x_ref, w_ref, b_ref, y_ref):
    # x_ref: (RT, G*I)   w_ref: (G*I, G*H)  [block-diagonal W1^T]
    # b_ref: (1, G*H)    y_ref: (RT, G*H)
    z = jnp.dot(x_ref[...], w_ref[...], preferred_element_type=jnp.float32)
    y_ref[...] = _atan_f32(z + b_ref[...]).astype(y_ref.dtype)


def _pick_group(input_size, hidden_size, lanes=_LANES, max_cols=512):
    """Rows packed per 'super-row' so the output store is a multiple of 128 lanes."""
    if hidden_size % lanes == 0:
        return 1
    g = lanes // math.gcd(hidden_size, lanes)      # smallest g: g*H % 128 == 0
    if g * hidden_size > max_cols:
        return 1                                   # weight block would blow up
    # Optionally also make the packed *input* width a multiple of 128 lanes.
    while (g * input_size) % lanes != 0 and 2 * g * max(input_size, hidden_size) <= max_cols:
        g *= 2
    return g


@functools.partial(jax.jit, static_argnames=("tile_rows",))
def rnn_forward(x, W1, W2, b1, b2, h=None, *, tile_rows=1024):
    """x: (B, T, I) float32.  Returns (y: (B, T, H), y_last: (B, 1, H))."""
    B, T, I = x.shape
    H = W1.shape[0]
    dtype = x.dtype
    if h is None:
        h = jnp.zeros((H,), dtype=dtype)

    # ---- grid-invariant work hoisted out of the kernel ----------------------
    b_eff = b1 + b2 + W2 @ h                        # (H,), same for every row

    N = B * T
    G = _pick_group(I, H)                           # rows packed per super-row
    gran = 8 * G                                    # row-count granularity

    # ---- tile sizing: as big as the VMEM budget allows (portable to v7x) ----
    w_bytes = (G * I) * (G * H) * 4
    budget = 24 * 1024 * 1024 - 2 * w_bytes         # double-buffered tiles budget
    tr = max(gran, _round_up(min(tile_rows, _round_up(N, gran)), gran))
    while tr > gran and 2 * tr * (I + H) * 4 > budget:
        tr = _round_up(tr // 2, gran)
    # Prefer >= 2 grid steps so both v7x TensorCores get work (and pipelining).
    n_min = _round_up(N, gran)
    if n_min > gran and pl.cdiv(n_min, tr) < 2:
        tr = max(gran, _round_up(pl.cdiv(N, 2), gran))
    Np = _round_up(N, tr)
    grid = (Np // tr,)
    rt = tr // G                                    # packed rows per tile

    # ---- lane-dense packing: G rows -> one (G*I)->(G*H) super-row -----------
    x2d = x.reshape(N, I)
    if Np != N:
        x2d = jnp.concatenate([x2d, jnp.zeros((Np - N, I), dtype=dtype)], axis=0)
    xp = x2d.reshape(Np // G, G * I)                # free row-major view

    w1t = W1.T.astype(dtype)                        # (I, H)
    if G > 1:
        # Block-diagonal weight: out[r, q*H+h] = sum_i x[G*r+q, i] * W1^T[i, h]
        w_big = (jnp.eye(G, dtype=dtype)[:, None, :, None]
                 * w1t[None, :, None, :]).reshape(G * I, G * H)
        b_big = jnp.tile(b_eff, (G,)).reshape(1, G * H)
    else:
        w_big = w1t
        b_big = b_eff.reshape(1, H)

    need = 2 * tr * (I + H) * 4 + 2 * w_bytes + 2 * G * H * 4
    vmem_limit = int(min(32 * 1024 * 1024,
                         max(16 * 1024 * 1024, need + (4 << 20))))

    yp = pl.pallas_call(
        _rnn_kernel,
        out_shape=jax.ShapeDtypeStruct((Np // G, G * H), dtype),
        grid=grid,
        in_specs=[
            pl.BlockSpec((rt, G * I), lambda i: (i, 0)),
            pl.BlockSpec((G * I, G * H), lambda i: (0, 0)),
            pl.BlockSpec((1, G * H), lambda i: (0, 0)),
        ],
        out_specs=pl.BlockSpec((rt, G * H), lambda i: (i, 0)),
        compiler_params=pltpu.CompilerParams(
            dimension_semantics=("parallel",),
            vmem_limit_bytes=vmem_limit),
    )(xp, w_big, b_big)

    y = yp.reshape(Np, H)[:N].reshape(B, T, H)
    y_last = y[:, -1:, :]                           # == y[:, -1, :].unsqueeze(1)
    return y, y_last


def _reference(x, W1, W2, b1, b2, h=None):
    H = W1.shape[0]
    if h is None:
        h = jnp.zeros((H,), dtype=x.dtype)
    pre = (jnp.einsum("hi,bti->bth", W1, x, precision="highest")
           + b1[None, None, :]
           + (W2 @ h)[None, None, :]
           + b2[None, None, :])
    y = jnp.arctan(pre)
    return y, y[:, -1:, :]


if __name__ == "__main__":
    B, T = 2, 8
    input_size, hidden_size = 16, 32

    key = jax.random.PRNGKey(0)
    kx, kw1, kw2, kh = jax.random.split(key, 4)

    W1 = jax.random.normal(kw1, (hidden_size, input_size), dtype=jnp.float32)
    W2 = jax.random.normal(kw2, (hidden_size, hidden_size), dtype=jnp.float32)
    b1 = jnp.zeros((hidden_size,), dtype=jnp.float32)
    b2 = jnp.zeros((hidden_size,), dtype=jnp.float32)
    x = jax.random.normal(kx, (B, T, input_size), dtype=jnp.float32)

    # Default hidden state (h = zeros), as in the PyTorch forward.
    y, y_last = rnn_forward(x, W1, W2, b1, b2)
    jax.block_until_ready((y, y_last))

    y_ref, y_last_ref = _reference(x, W1, W2, b1, b2)
    assert y.shape == (B, T, hidden_size)
    assert y_last.shape == (B, 1, hidden_size)
    assert jnp.allclose(y, y_ref, atol=2e-2, rtol=1e-2)
    assert jnp.allclose(y_last, y_last_ref, atol=2e-2, rtol=1e-2)

    # Also exercise an explicit nonzero h (checks the fused-bias path).
    h0 = 0.1 * jax.random.normal(kh, (hidden_size,), dtype=jnp.float32)
    y2, y2_last = rnn_forward(x, W1, W2, b1, b2, h0)
    jax.block_until_ready((y2, y2_last))
    y2_ref, y2_last_ref = _reference(x, W1, W2, b1, b2, h0)
    assert jnp.allclose(y2, y2_ref, atol=2e-2, rtol=1e-2)
    assert jnp.allclose(y2_last, y2_last_ref, atol=2e-2, rtol=1e-2)

    print("KERNEL_OK")
</pallas_src>

<mosaic_0001>
module attributes {stable_mosaic.version = 11 : i64} {
  func.func @_rnn_kernel(%arg0: i32, %arg1: memref<8x128xf32, #tpu.memory_space<vmem>>, %arg2: memref<128x256xf32, #tpu.memory_space<vmem>>, %arg3: memref<1x256xf32, #tpu.memory_space<vmem>>, %arg4: memref<8x256xf32, #tpu.memory_space<vmem>>) attributes {dimension_semantics = [#tpu.dimension_semantics<parallel>], iteration_bounds = array<i64: 1>, scalar_prefetch = 0 : i64, scratch_operands = 0 : i64, tpu.core_type = #tpu.core_type<tc>, window_params = [{transform_indices = @transform_0, window_bounds = array<i64: 8, 128>}, {pipeline_mode = #tpu.pipeline_mode<synchronous>, transform_indices = @transform_1, window_bounds = array<i64: 128, 256>}, {pipeline_mode = #tpu.pipeline_mode<synchronous>, transform_indices = @transform_2, window_bounds = array<i64: 1, 256>}, {transform_indices = @transform_3, window_bounds = array<i64: 8, 256>}]} {
    %c0 = arith.constant 0 : index
    %c0_0 = arith.constant 0 : index
    %0 = vector.load %arg1[%c0, %c0_0] : memref<8x128xf32, #tpu.memory_space<vmem>>, vector<8x128xf32>
    %c0_1 = arith.constant 0 : index
    %c0_2 = arith.constant 0 : index
    %1 = vector.load %arg2[%c0_1, %c0_2] : memref<128x256xf32, #tpu.memory_space<vmem>>, vector<128x256xf32>
    %cst = arith.constant dense<0.000000e+00> : vector<8x256xf32>
    %2 = tpu.matmul %0, %1, %cst {dimension_numbers = #tpu.dot_dimension_numbers<[1], [0], [0], [1], [0, 0, 1, 1], [], []>} : vector<8x128xf32>, vector<128x256xf32>, vector<8x256xf32> -> vector<8x256xf32>
    %c0_3 = arith.constant 0 : index
    %c0_4 = arith.constant 0 : index
    %3 = vector.load %arg3[%c0_3, %c0_4] : memref<1x256xf32, #tpu.memory_space<vmem>>, vector<1x256xf32>
    %4 = vector.broadcast %3 : vector<1x256xf32> to vector<8x256xf32>
    %5 = arith.addf %2, %4 : vector<8x256xf32>
    %6 = math.absf %5 : vector<8x256xf32>
    %cst_5 = arith.constant 2.41421366 : f32
    %7 = vector.broadcast %cst_5 : f32 to vector<8x256xf32>
    %8 = arith.cmpf ogt, %6, %7 : vector<8x256xf32>
    %cst_6 = arith.constant 0.414213568 : f32
    %9 = vector.broadcast %cst_6 : f32 to vector<8x256xf32>
    %10 = arith.cmpf ogt, %6, %9 : vector<8x256xf32>
    %cst_7 = arith.constant dense<true> : vector<8x256xi1>
    %11 = arith.xori %8, %cst_7 : vector<8x256xi1>
    %12 = arith.andi %10, %11 : vector<8x256xi1>
    %cst_8 = arith.constant 0.000000e+00 : f32
    %cst_9 = arith.constant 1.000000e+00 : f32
    %13 = arith.subf %cst_8, %cst_9 : f32
    %cst_10 = arith.constant 1.000000e+00 : f32
    %14 = vector.broadcast %cst_10 : f32 to vector<8x256xf32>
    %15 = arith.subf %6, %14 : vector<8x256xf32>
    %16 = arith.select %12, %15, %6 : vector<8x256xi1>, vector<8x256xf32>
    %17 = vector.broadcast %13 : f32 to vector<8x256xf32>
    %18 = arith.select %8, %17, %16 : vector<8x256xi1>, vector<8x256xf32>
    %cst_11 = arith.constant 1.000000e+00 : f32
    %19 = vector.broadcast %cst_11 : f32 to vector<8x256xf32>
    %20 = arith.addf %6, %19 : vector<8x256xf32>
    %cst_12 = arith.constant 1.000000e+00 : f32
    %21 = vector.broadcast %cst_12 : f32 to vector<8x256xf32>
    %22 = arith.select %12, %20, %21 : vector<8x256xi1>, vector<8x256xf32>
    %23 = arith.select %8, %6, %22 : vector<8x256xi1>, vector<8x256xf32>
    %24 = tpu.reciprocal %23 {approx = true} : vector<8x256xf32> -> vector<8x256xf32>
    %25 = arith.mulf %18, %24 : vector<8x256xf32>
    %26 = arith.mulf %25, %25 : vector<8x256xf32>
    %cst_13 = arith.constant 0.0805374458 : f32
    %27 = vector.broadcast %cst_13 : f32 to vector<8x256xf32>
    %28 = arith.mulf %27, %26 : vector<8x256xf32>
    %cst_14 = arith.constant -0.138776854 : f32
    %29 = vector.broadcast %cst_14 : f32 to vector<8x256xf32>
    %30 = arith.addf %28, %29 : vector<8x256xf32>
    %31 = arith.mulf %30, %26 : vector<8x256xf32>
    %cst_15 = arith.constant 0.199777111 : f32
    %32 = vector.broadcast %cst_15 : f32 to vector<8x256xf32>
    %33 = arith.addf %31, %32 : vector<8x256xf32>
    %34 = arith.mulf %33, %26 : vector<8x256xf32>
    %cst_16 = arith.constant -0.333329499 : f32
    %35 = vector.broadcast %cst_16 : f32 to vector<8x256xf32>
    %36 = arith.addf %34, %35 : vector<8x256xf32>
    %37 = arith.mulf %36, %26 : vector<8x256xf32>
    %38 = arith.mulf %37, %25 : vector<8x256xf32>
    %39 = arith.addf %38, %25 : vector<8x256xf32>
    %cst_17 = arith.constant 0.785398185 : f32
    %cst_18 = arith.constant 0.000000e+00 : f32
    %40 = vector.broadcast %cst_17 : f32 to vector<8x256xf32>
    %41 = vector.broadcast %cst_18 : f32 to vector<8x256xf32>
    %42 = arith.select %12, %40, %41 : vector<8x256xi1>, vector<8x256xf32>
    %cst_19 = arith.constant 1.57079637 : f32
    %43 = vector.broadcast %cst_19 : f32 to vector<8x256xf32>
    %44 = arith.select %8, %43, %42 : vector<8x256xi1>, vector<8x256xf32>
    %45 = arith.addf %44, %39 : vector<8x256xf32>
    %cst_20 = arith.constant 0.000000e+00 : f32
    %46 = vector.broadcast %cst_20 : f32 to vector<8x256xf32>
    %47 = arith.cmpf olt, %5, %46 : vector<8x256xf32>
    %cst_21 = arith.constant 0.000000e+00 : f32
    %48 = vector.broadcast %cst_21 : f32 to vector<8x256xf32>
    %49 = arith.subf %48, %45 : vector<8x256xf32>
    %50 = arith.select %47, %49, %45 : vector<8x256xi1>, vector<8x256xf32>
    %c0_22 = arith.constant 0 : index
    %c0_23 = arith.constant 0 : index
    %51 = vector.load %arg4[%c0_22, %c0_23] : memref<8x256xf32, #tpu.memory_space<vmem>>, vector<8x256xf32>
    tpu.vector_store %arg4[%c0_22, %c0_23], %50 {strides = array<i32>} : memref<8x256xf32, #tpu.memory_space<vmem>>, vector<8x256xf32>,
    return
  }
  func.func @transform_0(%arg0: i32) -> (i32, i32) {
    %c0_i32 = arith.constant 0 : i32
    %c0_i32_0 = arith.constant 0 : i32
    return %arg0, %c0_i32 : i32, i32
  }
  func.func @transform_1(%arg0: i32) -> (i32, i32) {
    %c0_i32 = arith.constant 0 : i32
    %c0_i32_0 = arith.constant 0 : i32
    %c0_i32_1 = arith.constant 0 : i32
    return %c0_i32, %c0_i32_0 : i32, i32
  }
  func.func @transform_2(%arg0: i32) -> (i32, i32) {
    %c0_i32 = arith.constant 0 : i32
    %c0_i32_0 = arith.constant 0 : i32
    %c0_i32_1 = arith.constant 0 : i32
    return %c0_i32, %c0_i32_0 : i32, i32
  }
  func.func @transform_3(%arg0: i32) -> (i32, i32) {
    %c0_i32 = arith.constant 0 : i32
    %c0_i32_0 = arith.constant 0 : i32
    return %arg0, %c0_i32 : i32, i32
  }
}

</mosaic_0001>

<bundles_post_ra>
// kernel: tile.8
= control target key start
LH: loop header
LB: loop body
LE: loop exit
PB: predicated region body
PF: predicated region fallthrough
CT: control target
= control target key end

     0   :  { %s22_s0 = inlined_call_operand.vmem [shape: f32[32], index: 0, kind: input, shape index: {}]   ;;  %s23_s1 = inlined_call_operand.vmem [shape: f32[8,32], index: 1, kind: output, shape index: {}]  }
   0x1   :  { %v4_v0 = vld [vmem:[%s22_s0] ss:$0 sm:$0xff] }
   0x2   :  { %5 = vst [vmem:[%s23_s1] sm:$0xff] %v4_v0 }

// kernel: tile.9
= control target key start
LH: loop header
LB: loop body
LE: loop exit
PB: predicated region body
PF: predicated region fallthrough
CT: control target
= control target key end

     0   :  { %s7_s6 = smov 3  ;;  %s14_s9 = smov 3  ;;  %vm4_vm0 = vcmask 261120   ;;  %vm11_vm1 = vcmask 1048320   ;;  %vm18_vm2 = vcmask 785920   ;;  %vm25_vm3 = vcmask 523520   ;;  %s76_s0 = inlined_call_operand.vmem [shape: f32[8,32], index: 0, kind: input, shape index: {}]   ;;  %s77_s1 = inlined_call_operand.vmem [shape: f32[1,256], index: 1, kind: output, shape index: {}]  }
   0x1   :  { %v38_v0 = vld [vmem:[%s76_s0 + $0x3] ss:$4 sm:%s7_s6]   ;;  %s45_s10 = smov 96   ;;  %s21_s11 = smov 3  ;;  %v39_v1 = vld [vmem:[%s76_s0 + $0x2] ss:$4 sm:%s14_s9]  }
   0x2   :  { %9 = vrot.lane.b32.xlu0 %v38_v0, %s45_s10  ;;  %v40_v2 = vld [vmem:[%s76_s0 + $0x1] ss:$4 sm:%s21_s11]   ;;  %s2_s16 = smov 3  ;;  %s46_s17 = smov 32  }
   0x3   :  { %23 = vrot.lane.b32.xlu1 %v40_v2, %s46_s17  ;;  %v3_v3 = vld [vmem:[%s76_s0] ss:$4 sm:%s2_s16]   ;;  %s47_s0 = smov 64  }
   0x4   :  { %5 = vst.msk [vmem:[#allocation0] ss:$8 sm:$0x3] %vm4_vm0, %v3_v3  }
   0x6   :  { %16 = vrot.lane.b32.xlu0 %v39_v1, %s47_s0 }
  0x74   :  { %v10_v4 = vpop.permute.xlu0 %9  }
  0x75   :  { %12 = vst.msk [vmem:[#allocation0] ss:$8 sm:$0x3] %vm11_vm1, %v10_v4   ;;  %v24_v5 = vpop.permute.xlu1 %23  }
  0x78   :  { %v17_v6 = vpop.permute.xlu0 %16  }
  0x79   :  { %19 = vst.msk [vmem:[#allocation0] ss:$8 sm:$0x3] %vm18_vm2, %v17_v6  }
  0x7a   :  { %26 = vst.msk [vmem:[#allocation0] ss:$8 sm:$0x3] %vm25_vm3, %v24_v5  }
  0x81   :  { %v30_v7 = vld [vmem:[#allocation0] sm:$0x1]  ;;  %v34_v8 = vld [vmem:[#allocation0 + $0x8] sm:$0x1] }
  0x82   :  { %32 = vst [vmem:[%s77_s1] sm:$0x1] %v30_v7  ;;  %41 = vst [vmem:[%s77_s1 + $0x1] sm:$0x1] %v34_v8 }

// kernel: rnn_forward.1
= control target key start
LH: loop header
LB: loop body
LE: loop exit
PB: predicated region body
PF: predicated region fallthrough
CT: control target
= control target key end

     0   :  { %v234_v3 = vmov 0.0   ;;  %v49_v50 = vlaneseq  ;;  %vm235_vm2 = vmmov 1   ;;  %s403_s1 = inlined_call_operand.vmem [shape: f32[128,256], index: 1, kind: input, shape index: {}]   ;;  %s404_s0 = inlined_call_operand.vmem [shape: f32[8,128], index: 0, kind: input, shape index: {}]   ;;  %s405_s2 = inlined_call_operand.vmem [shape: f32[1,256], index: 2, kind: input, shape index: {}]   ;;  %s406_s3 = inlined_call_operand.vmem [shape: f32[8,256], index: 3, kind: output, shape index: {}]  }
   0x1   :  { %v16_v0 = vld [vmem:[%s403_s1 + $0x8] sm:$0xff]  ;;  %v18_v1 = vld [vmem:[%s403_s1 + $0x18] sm:$0xff]  ;;  %v15_v2 = vld [vmem:[%s403_s1] sm:$0xff]  ;;  %123 = vmatprep.mubr.f32.mxu0 %v234_v3 }
   0x2   :  { %v196_v4 = vpack.c.bf16 %v18_v1, %v16_v0  ;;  %v17_v5 = vld [vmem:[%s403_s1 + $0x10] sm:$0xff]  ;;  %v20_v6 = vld [vmem:[%s403_s1 + $0x28] sm:$0xff]  ;;  %v22_v7 = vld [vmem:[%s403_s1 + $0x38] sm:$0xff]  ;;  %v50_v51 = vshrl.u32 %v49_v50, 7 }
   0x3   :  { %v198_v8 = vpack.c.bf16 %v17_v5, %v15_v2  ;;  %v200_v9 = vpack.c.bf16 %v22_v7, %v20_v6  ;;  %v19_v10 = vld [vmem:[%s403_s1 + $0x20] sm:$0xff]  ;;  %v21_v11 = vld [vmem:[%s403_s1 + $0x30] sm:$0xff]  ;;  %v24_v12 = vld [vmem:[%s403_s1 + $0x48] sm:$0xff] }
   0x4   :  { %197 = vmatprep.subr.bf16.mxu0 %v196_v4  ;;  %v26_v13 = vld [vmem:[%s403_s1 + $0x58] sm:$0xff]  ;;  %v202_v14 = vpack.c.bf16 %v21_v11, %v19_v10  ;;  %v23_v16 = vld [vmem:[%s403_s1 + $0x40] sm:$0xff]  ;;  %v25_v17 = vld [vmem:[%s403_s1 + $0x50] sm:$0xff]  ;;  %v51_v52 = vsub.s32 0, %v50_v51  ;;  %v55_v54 = vsub.s32 1, %v50_v51 }
   0x5   :  { %199 = vmatpush1.bf16.msra.mxu0 %v198_v8  ;;  %v204_v15 = vpack.c.bf16 %v26_v13, %v24_v12  ;;  %v28_v18 = vld [vmem:[%s403_s1 + $0x68] sm:$0xff]  ;;  %v30_v19 = vld [vmem:[%s403_s1 + $0x78] sm:$0xff]  ;;  %v206_v20 = vpack.c.bf16 %v25_v17, %v23_v16  ;;  %v27_v22 = vld [vmem:[%s403_s1 + $0x60] sm:$0xff] }
   0x6   :  { %201 = vmatprep.subr.bf16.mxu0 %v200_v9  ;;  %v208_v21 = vpack.c.bf16 %v30_v19, %v28_v18  ;;  %v29_v23 = vld [vmem:[%s403_s1 + $0x70] sm:$0xff]  ;;  %v32_v24 = vld [vmem:[%s403_s1 + $0x88] sm:$0xff]  ;;  %v34_v25 = vld [vmem:[%s403_s1 + $0x98] sm:$0xff] }
   0x7   :  { %v210_v26 = vpack.c.bf16 %v29_v23, %v27_v22  ;;  %v212_v27 = vpack.c.bf16 %v34_v25, %v32_v24  ;;  %v31_v28 = vld [vmem:[%s403_s1 + $0x80] sm:$0xff]  ;;  %v33_v29 = vld [vmem:[%s403_s1 + $0x90] sm:$0xff]  ;;  %v36_v30 = vld [vmem:[%s403_s1 + $0xa8] sm:$0xff] }
   0x8   :  { %v38_v31 = vld [vmem:[%s403_s1 + $0xb8] sm:$0xff]  ;;  %v214_v32 = vpack.c.bf16 %v33_v29, %v31_v28  ;;  %v35_v34 = vld [vmem:[%s403_s1 + $0xa0] sm:$0xff]  ;;  %v37_v35 = vld [vmem:[%s403_s1 + $0xb0] sm:$0xff] }
   0x9   :  { %203 = vmatpush1.bf16.msra.mxu0 %v202_v14  ;;  %v216_v33 = vpack.c.bf16 %v38_v31, %v36_v30  ;;  %v40_v36 = vld [vmem:[%s403_s1 + $0xc8] sm:$0xff]  ;;  %v42_v37 = vld [vmem:[%s403_s1 + $0xd8] sm:$0xff]  ;;  %v218_v38 = vpack.c.bf16 %v37_v35, %v35_v34  ;;  %v39_v40 = vld [vmem:[%s403_s1 + $0xc0] sm:$0xff] }
   0xa   :  { %205 = vmatprep.subr.bf16.mxu0 %v204_v15  ;;  %v220_v39 = vpack.c.bf16 %v42_v37, %v40_v36  ;;  %v41_v41 = vld [vmem:[%s403_s1 + $0xd0] sm:$0xff]  ;;  %v44_v42 = vld [vmem:[%s403_s1 + $0xe8] sm:$0xff]  ;;  %v46_v43 = vld [vmem:[%s403_s1 + $0xf8] sm:$0xff] }
   0xb   :  { %v222_v44 = vpack.c.bf16 %v41_v41, %v39_v40  ;;  %v224_v45 = vpack.c.bf16 %v46_v43, %v44_v42  ;;  %v43_v46 = vld [vmem:[%s403_s1 + $0xe0] sm:$0xff]  ;;  %v45_v47 = vld [vmem:[%s403_s1 + $0xf0] sm:$0xff] }
   0xc   :  { %v226_v48 = vpack.c.bf16 %v45_v47, %v43_v46  ;;  %v14_v49 = vld [vmem:[%s404_s0] sm:$0xff] }
   0xd   :  { %207 = vmatpush1.bf16.msra.mxu0 %v206_v20  ;;  %v47_v53 = vld [vmem:[%s405_s2] sm:$0x3] }
   0xe   :  { %209 = vmatprep.subr.bf16.mxu0 %v208_v21  ;;  %v52_v55 = vrot.slane %v47_v53, %v51_v52  ;;  %v56_v56 = vrot.slane %v47_v53, %v55_v54 }
  0x11   :  { %211 = vmatpush1.bf16.msra.mxu0 %v210_v26 }
  0x12   :  { %213 = vmatprep.subr.bf16.mxu0 %v212_v27 }
  0x15   :  { %215 = vmatpush1.bf16.msra.mxu0 %v214_v32 }
  0x16   :  { %217 = vmatprep.subr.bf16.mxu0 %v216_v33 }
  0x19   :  { %219 = vmatpush1.bf16.msra.mxu0 %v218_v38 }
  0x1a   :  { %221 = vmatprep.subr.bf16.mxu0 %v220_v39 }
  0x1d   :  { %223 = vmatpush1.bf16.msra.mxu0 %v222_v44 }
  0x1e   :  { %225 = vmatprep.subr.bf16.mxu0 %v224_v45 }
  0x21   :  { %227 = vmatpush1.bf16.msra.mxu0 %v226_v48 }
  0x24   :  { %124 = vmatmul.mubr.f32.vlgmr.msra.gmra.mrb[0].mxu0 %v14_v49 }
  0xf7   :  { %v125_v57 = vpop.f32.mrb[0].mxu0 }
  0xf8   :  { %v359_v58 = vadd.f32 %v125_v57, %v52_v55  ;;  %v127_v59 = vpop.f32.mrb[1].mxu0 }
  0xf9   :  { %v361_v60 = vadd.f32 %v127_v59, %v56_v56 }
  0xfa   :  { %v130_v61 = vand.u32 2147483647, %v359_v58  ;;  %vm182_vm9 = vcmp.lt.f32.partialorder %v359_v58, 0.0 }
  0xfb   :  { %v131_v62 = vand.u32 2147483647, %v361_v60  ;;  %vm183_vm10 = vcmp.lt.f32.partialorder %v361_v60, 0.0 }
  0xfc   :  { %vm132_vm0 = vcmp.gt.f32.partialorder %v130_v61, 2.4142137  ;;  %vm134_vm1 = vcmp.gt.f32.partialorder %v130_v61, 0.41421357  ;;  %v146_v63 = vadd.f32 1.0, %v130_v61  ;;  %v194_v8 = vadd.f32 -1.0, %v130_v61 }
  0xfd   :  { %vm136_vm3 = vmxor %vm132_vm0, %vm235_vm2  ;;  %vm133_vm4 = vcmp.gt.f32.partialorder %v131_v62, 2.4142137  ;;  %vm135_vm5 = vcmp.gt.f32.partialorder %v131_v62, 0.41421357  ;;  %v147_v0 = vadd.f32 1.0, %v131_v62  ;;  %v195_v9 = vadd.f32 -1.0, %v131_v62 }
  0xfe   :  { %vm366_vm6 = vmand %vm134_vm1, %vm136_vm3 }
  0xff   :  { %v148_v2 = vsel %vm366_vm6, %v146_v63, 1.0  ;;  %vm137_vm7 = vmxor %vm133_vm4, %vm235_vm2  ;;  %v142_v10 = vsel %vm366_vm6, %v194_v8, %v130_v61  ;;  %v176_v34 = vsel %vm366_vm6, 0.7853982, %v234_v3 }
 0x100   :  { %v150_v4 = vsel %vm132_vm0, %v130_v61, %v148_v2  ;;  %vm374_vm8 = vmand %vm135_vm5, %vm137_vm7  ;;  %v144_v13 = vsel %vm132_vm0, -1.0, %v142_v10  ;;  %v178_v39 = vsel %vm132_vm0, 1.5707964, %v176_v34 }
 0x101   :  { %230 = vrcp.f32 %v150_v4  ;;  %v149_v6 = vsel %vm374_vm8, %v147_v0, 1.0  ;;  %v143_v11 = vsel %vm374_vm8, %v195_v9, %v131_v62  ;;  %v177_v38 = vsel %vm374_vm8, 0.7853982, %v234_v3 }
 0x102   :  { %v151_v7 = vsel %vm133_vm4, %v131_v62, %v149_v6  ;;  %v145_v16 = vsel %vm133_vm4, -1.0, %v143_v11  ;;  %v179_v42 = vsel %vm133_vm4, 1.5707964, %v177_v38 }
 0x103   :  { %232 = vrcp.f32 %v151_v7 }
 0x10b   :  { %v231_v12 = vpop.eup %230 }
 0x10c   :  { %v154_v14 = vmul.f32 %v231_v12, %v144_v13 }
 0x10d   :  { %v233_v15 = vpop.eup %232 }
 0x10e   :  { %v156_v17 = vmul.f32 %v154_v14, %v154_v14  ;;  %v155_v18 = vmul.f32 %v233_v15, %v145_v16 }
 0x110   :  { %v158_v19 = vmul.f32 0.080537446, %v156_v17  ;;  %v157_v20 = vmul.f32 %v155_v18, %v155_v18 }
 0x112   :  { %v160_v21 = vadd.f32 -0.13877685, %v158_v19  ;;  %v159_v22 = vmul.f32 0.080537446, %v157_v20 }
 0x114   :  { %v162_v23 = vmul.f32 %v160_v21, %v156_v17  ;;  %v161_v24 = vadd.f32 -0.13877685, %v159_v22 }
 0x116   :  { %v164_v25 = vadd.f32 0.19977711, %v162_v23  ;;  %v163_v26 = vmul.f32 %v161_v24, %v157_v20 }
 0x118   :  { %v166_v27 = vmul.f32 %v164_v25, %v156_v17  ;;  %v165_v28 = vadd.f32 0.19977711, %v163_v26 }
 0x11a   :  { %v168_v29 = vadd.f32 -0.3333295, %v166_v27  ;;  %v167_v30 = vmul.f32 %v165_v28, %v157_v20 }
 0x11c   :  { %v170_v31 = vmul.f32 %v168_v29, %v156_v17  ;;  %v169_v32 = vadd.f32 -0.3333295, %v167_v30 }
 0x11e   :  { %v172_v33 = vmul.f32 %v170_v31, %v154_v14  ;;  %v171_v35 = vmul.f32 %v169_v32, %v157_v20 }
 0x120   :  { %v174_v36 = vadd.f32 %v172_v33, %v154_v14  ;;  %v173_v37 = vmul.f32 %v171_v35, %v155_v18 }
 0x122   :  { %v180_v40 = vadd.f32 %v178_v39, %v174_v36  ;;  %v175_v41 = vadd.f32 %v173_v37, %v155_v18 }
 0x124   :  { %v184_v43 = vsub.f32 0.0, %v180_v40  ;;  %v181_v44 = vadd.f32 %v179_v42, %v175_v41 }
 0x126   :  { %v186_v45 = vsel %vm182_vm9, %v184_v43, %v180_v40  ;;  %v185_v46 = vsub.f32 0.0, %v181_v44 }
 0x127   :  { %188 = vst [vmem:[%s406_s3] sm:$0xff] %v186_v45 }
 0x128   :  { %v187_v47 = vsel %vm183_vm10, %v185_v46, %v181_v44 }
 0x129   :  { %189 = vst [vmem:[%s406_s3 + $0x8] sm:$0xff] %v187_v47 }

</bundles_post_ra>
